<compile_context>
chip_gen: v7x
topology: tpu7x:2x2x1
jax: 0.10.0
libtpu: 0.0.40
codegen_flags: <defaults>
</compile_context>

<pallas_src>
import jax
import jax.numpy as jnp
from jax.experimental import pallas as pl
from jax.experimental.pallas import tpu as pltpu


# ----------------------------- config (small) --------------------------------
VOCAB_SIZE = 100
EMBED_SIZE = 32          # config.embedding_size
HIDDEN_SIZE = 64         # config.hidden_size  (!= embedding_size -> embed_proj)
MAX_POS = 128            # config.max_position_embeddings
LAYER_NORM_EPS = 1e-7    # config.layer_norm_eps
PAD_TOKEN_ID = 0
# type_vocab_size = 0 -> no token_type_embeddings (forward never adds them)
# position_biased_input = True


# ------------------------------ Pallas kernel --------------------------------
def _make_kernel(B, S_txt, S_gnn, E, H, V_pad, eps):
    S = S_txt + S_gnn
    N_txt = B * S_txt

    def kernel(ids_ref, word_ref, gnn_ref, pos_ref, w_ref, gb_ref, mask_ref,
               out_ref):
        # ids_ref  : (B*S_txt, 1)   int32  VMEM   flattened input_ids
        # word_ref : (V_pad, E)     f32    VMEM   zero-padded word table
        # gnn_ref  : (B, S_gnn, E)  f32    VMEM   gnn embeddings
        # pos_ref  : (S, E)         f32    VMEM   position embeddings [0, S)
        # w_ref    : (E, H)         f32    VMEM   embed_proj weight (x @ W)
        # gb_ref   : (2, H)         f32    VMEM   row0 = gamma, row1 = beta
        # mask_ref : (B*S, 1)       f32    VMEM   attention mask
        # out_ref  : (B*S, H)       f32    VMEM

        # --- one-hot MXU gather of the word embeddings ------------------------
        ids = ids_ref[...]                                        # (N_txt, 1) i32
        lane = jax.lax.broadcasted_iota(jnp.int32, (N_txt, V_pad), 1)
        onehot = jnp.where(lane == ids, 1.0, 0.0).astype(jnp.float32)
        x_txt = jnp.dot(onehot, word_ref[...],
                        preferred_element_type=jnp.float32)       # (N_txt, E)

        # --- assemble [word | gnn] + position bias entirely in vregs ----------
        pos = pos_ref[...]                                        # (S, E)
        pieces = []
        for b in range(B):                                        # B tiny, static
            xb = jnp.concatenate(
                [x_txt[b * S_txt:(b + 1) * S_txt, :], gnn_ref[b]], axis=0)
            pieces.append(xb + pos)                               # (S, E)
        x = jnp.concatenate(pieces, axis=0)                       # (B*S, E)

        # --- embed_proj: one (B*S, E) @ (E, H) MXU push ------------------------
        h = jnp.dot(x, w_ref[...], preferred_element_type=jnp.float32)

        # --- LayerNorm over H (biased variance, like torch.nn.LayerNorm) -------
        mu = jnp.mean(h, axis=-1, keepdims=True)
        diff = h - mu
        var = jnp.mean(diff * diff, axis=-1, keepdims=True)
        inv = jax.lax.rsqrt(var + eps)                            # EUP
        gamma = gb_ref[0:1, :]
        beta = gb_ref[1:2, :]
        y = diff * inv * gamma + beta

        # --- mask multiply (broadcast on the VPU) + store -----------------------
        # TODO(synk): StableDropout is identity in eval mode; no dropout applied.
        out_ref[...] = (y * mask_ref[...]).astype(out_ref.dtype)

    return kernel


# ------------------------------- wrapper --------------------------------------
@jax.jit
def deberta_v2_embeddings(input_ids, gnn_embeds, mask, params):
    """Reproduces DebertaV2Embeddings.forward as one fused Pallas call."""
    word_table = params["word_embeddings"]          # (V, E)
    pos_table = params["position_embeddings"]       # (MAX_POS, E)
    proj_w = params["embed_proj_w"]                 # (E, H)  (x @ W layout)
    V, E = word_table.shape
    H = proj_w.shape[1]

    B, S_txt = input_ids.shape
    S_gnn = gnn_embeds.shape[1]
    S = S_txt + S_gnn
    if S > pos_table.shape[0]:
        raise ValueError("sequence length exceeds max_position_embeddings")

    # glue: tiny reshapes / pads only (cheap under jit)
    V_pad = -(-V // 128) * 128                      # pad vocab to a lane multiple
    word_pad = jnp.zeros((V_pad, E), word_table.dtype).at[:V].set(word_table)
    ids2d = input_ids.reshape(B * S_txt, 1).astype(jnp.int32)
    pos = pos_table[:S]
    gb = jnp.stack([params["ln_gamma"], params["ln_beta"]], axis=0)   # (2, H)
    mask2d = mask.astype(jnp.float32).reshape(B * S, 1)
    gnn = gnn_embeds.astype(jnp.float32)

    kernel = _make_kernel(B, S_txt, S_gnn, E, H, V_pad, LAYER_NORM_EPS)

    out2d = pl.pallas_call(
        kernel,
        out_shape=jax.ShapeDtypeStruct((B * S, H), jnp.float32),
        in_specs=[
            pl.BlockSpec(memory_space=pltpu.MemorySpace.VMEM),   # input_ids
            pl.BlockSpec(memory_space=pltpu.MemorySpace.VMEM),   # word table
            pl.BlockSpec(memory_space=pltpu.MemorySpace.VMEM),   # gnn embeds
            pl.BlockSpec(memory_space=pltpu.MemorySpace.VMEM),   # pos embeds
            pl.BlockSpec(memory_space=pltpu.MemorySpace.VMEM),   # proj weight
            pl.BlockSpec(memory_space=pltpu.MemorySpace.VMEM),   # gamma|beta
            pl.BlockSpec(memory_space=pltpu.MemorySpace.VMEM),   # mask
        ],
        out_specs=pl.BlockSpec(memory_space=pltpu.MemorySpace.VMEM),
    )(ids2d, word_pad, gnn, pos, proj_w, gb, mask2d)

    return out2d.reshape(B, S, H)


# ------------------------------ reference (JAX) -------------------------------
def _reference(input_ids, gnn_embeds, mask, params):
    word_table = params["word_embeddings"]
    pos_table = params["position_embeddings"]
    S = input_ids.shape[1] + gnn_embeds.shape[1]
    emb = jnp.concatenate(
        [jnp.take(word_table, input_ids, axis=0), gnn_embeds], axis=1)
    emb = emb + pos_table[:S][None]
    h = emb @ params["embed_proj_w"]
    mu = jnp.mean(h, axis=-1, keepdims=True)
    var = jnp.mean((h - mu) ** 2, axis=-1, keepdims=True)
    y = (h - mu) / jnp.sqrt(var + LAYER_NORM_EPS)
    y = y * params["ln_gamma"] + params["ln_beta"]
    y = y * mask.astype(y.dtype)[..., None]
    return y


# ---------------------------------- main --------------------------------------
if __name__ == "__main__":
    key = jax.random.PRNGKey(0)
    k_word, k_pos, k_proj, k_g, k_b, k_ids, k_gnn, k_mask = jax.random.split(key, 8)

    # deterministic parameter init (synthetic; matches module shapes)
    word_embeddings = 0.02 * jax.random.normal(
        k_word, (VOCAB_SIZE, EMBED_SIZE), jnp.float32)
    word_embeddings = word_embeddings.at[PAD_TOKEN_ID].set(0.0)  # padding_idx=0
    position_embeddings = 0.02 * jax.random.normal(
        k_pos, (MAX_POS, EMBED_SIZE), jnp.float32)
    embed_proj_w = 0.05 * jax.random.normal(
        k_proj, (EMBED_SIZE, HIDDEN_SIZE), jnp.float32)   # nn.Linear weight.T
    ln_gamma = 1.0 + 0.01 * jax.random.normal(k_g, (HIDDEN_SIZE,), jnp.float32)
    ln_beta = 0.01 * jax.random.normal(k_b, (HIDDEN_SIZE,), jnp.float32)

    params = dict(word_embeddings=word_embeddings,
                  position_embeddings=position_embeddings,
                  embed_proj_w=embed_proj_w,
                  ln_gamma=ln_gamma, ln_beta=ln_beta)

    # inputs: batch=2, text seq=8, gnn seq=8 -> total seq=16
    B, S_TXT, S_GNN = 2, 8, 8
    input_ids = jax.random.randint(k_ids, (B, S_TXT), 0, VOCAB_SIZE, jnp.int32)
    gnn_embeds = jax.random.normal(k_gnn, (B, S_GNN, EMBED_SIZE), jnp.float32)
    mask = (jax.random.uniform(k_mask, (B, S_TXT + S_GNN)) > 0.2).astype(jnp.float32)

    out = deberta_v2_embeddings(input_ids, gnn_embeds, mask, params)
    out = jax.block_until_ready(out)

    ref = _reference(input_ids, gnn_embeds, mask, params)
    assert out.shape == (B, S_TXT + S_GNN, HIDDEN_SIZE)
    assert jnp.allclose(out, ref, atol=1e-4, rtol=1e-4)
    print("KERNEL_OK")
</pallas_src>

<mosaic_0001>
module attributes {stable_mosaic.version = 11 : i64} {
  func.func @kernel(%arg0: memref<16x1xi32, #tpu.memory_space<vmem>>, %arg1: memref<128x32xf32, #tpu.memory_space<vmem>>, %arg2: memref<2x8x32xf32, #tpu.memory_space<vmem>>, %arg3: memref<16x32xf32, #tpu.memory_space<vmem>>, %arg4: memref<32x64xf32, #tpu.memory_space<vmem>>, %arg5: memref<2x64xf32, #tpu.memory_space<vmem>>, %arg6: memref<32x1xf32, #tpu.memory_space<vmem>>, %arg7: memref<32x64xf32, #tpu.memory_space<vmem>>) attributes {dimension_semantics = [], scalar_prefetch = 0 : i64, scratch_operands = 0 : i64, tpu.core_type = #tpu.core_type<tc>} {
    %c0 = arith.constant 0 : index
    %c0_0 = arith.constant 0 : index
    %0 = vector.load %arg0[%c0, %c0_0] : memref<16x1xi32, #tpu.memory_space<vmem>>, vector<16x1xi32>
    %1 = tpu.iota {dimensions = array<i32: 1>} : vector<16x128xi32>
    %2 = vector.broadcast %0 : vector<16x1xi32> to vector<16x128xi32>
    %3 = arith.cmpi eq, %1, %2 : vector<16x128xi32>
    %cst = arith.constant 1.000000e+00 : f32
    %cst_1 = arith.constant 0.000000e+00 : f32
    %4 = vector.broadcast %cst : f32 to vector<16x128xf32>
    %5 = vector.broadcast %cst_1 : f32 to vector<16x128xf32>
    %6 = arith.select %3, %4, %5 : vector<16x128xi1>, vector<16x128xf32>
    %c0_2 = arith.constant 0 : index
    %c0_3 = arith.constant 0 : index
    %7 = vector.load %arg1[%c0_2, %c0_3] : memref<128x32xf32, #tpu.memory_space<vmem>>, vector<128x32xf32>
    %cst_4 = arith.constant dense<0.000000e+00> : vector<16x32xf32>
    %8 = tpu.matmul %6, %7, %cst_4 {dimension_numbers = #tpu.dot_dimension_numbers<[1], [0], [0], [1], [0, 0, 1, 1], [], []>} : vector<16x128xf32>, vector<128x32xf32>, vector<16x32xf32> -> vector<16x32xf32>
    %c0_5 = arith.constant 0 : index
    %c0_6 = arith.constant 0 : index
    %9 = vector.load %arg3[%c0_5, %c0_6] : memref<16x32xf32, #tpu.memory_space<vmem>>, vector<16x32xf32>
    %10 = vector.extract_strided_slice %8 {offsets = [0, 0], sizes = [8, 32], strides = [1, 1]} : vector<16x32xf32> to vector<8x32xf32>
    %c0_7 = arith.constant 0 : index
    %c0_8 = arith.constant 0 : index
    %c0_9 = arith.constant 0 : index
    %11 = vector.load %arg2[%c0_7, %c0_8, %c0_9] : memref<2x8x32xf32, #tpu.memory_space<vmem>>, vector<1x8x32xf32>
    %12 = vector.shape_cast %11 : vector<1x8x32xf32> to vector<8x32xf32>
    %13 = tpu.concatenate %10, %12 in 0 : vector<8x32xf32>, vector<8x32xf32> -> vector<16x32xf32>
    %14 = arith.addf %13, %9 : vector<16x32xf32>
    %15 = vector.extract_strided_slice %8 {offsets = [8, 0], sizes = [8, 32], strides = [1, 1]} : vector<16x32xf32> to vector<8x32xf32>
    %c1 = arith.constant 1 : index
    %c0_10 = arith.constant 0 : index
    %c0_11 = arith.constant 0 : index
    %16 = vector.load %arg2[%c1, %c0_10, %c0_11] : memref<2x8x32xf32, #tpu.memory_space<vmem>>, vector<1x8x32xf32>
    %17 = vector.shape_cast %16 : vector<1x8x32xf32> to vector<8x32xf32>
    %18 = tpu.concatenate %15, %17 in 0 : vector<8x32xf32>, vector<8x32xf32> -> vector<16x32xf32>
    %19 = arith.addf %18, %9 : vector<16x32xf32>
    %20 = tpu.concatenate %14, %19 in 0 : vector<16x32xf32>, vector<16x32xf32> -> vector<32x32xf32>
    %c0_12 = arith.constant 0 : index
    %c0_13 = arith.constant 0 : index
    %21 = vector.load %arg4[%c0_12, %c0_13] : memref<32x64xf32, #tpu.memory_space<vmem>>, vector<32x64xf32>
    %cst_14 = arith.constant dense<0.000000e+00> : vector<32x64xf32>
    %22 = tpu.matmul %20, %21, %cst_14 {dimension_numbers = #tpu.dot_dimension_numbers<[1], [0], [0], [1], [0, 0, 1, 1], [], []>} : vector<32x32xf32>, vector<32x64xf32>, vector<32x64xf32> -> vector<32x64xf32>
    %cst_15 = arith.constant dense<0.000000e+00> : vector<32xf32>
    %23 = vector.multi_reduction <add>, %22, %cst_15 [1] : vector<32x64xf32> to vector<32xf32>
    %24 = vector.shape_cast %23 : vector<32xf32> to vector<32x1xf32>
    %cst_16 = arith.constant 6.400000e+01 : f32
    %25 = vector.broadcast %cst_16 : f32 to vector<32x1xf32>
    %26 = arith.divf %24, %25 : vector<32x1xf32>
    %27 = vector.broadcast %26 : vector<32x1xf32> to vector<32x64xf32>
    %28 = arith.subf %22, %27 : vector<32x64xf32>
    %29 = arith.mulf %28, %28 : vector<32x64xf32>
    %cst_17 = arith.constant dense<0.000000e+00> : vector<32xf32>
    %30 = vector.multi_reduction <add>, %29, %cst_17 [1] : vector<32x64xf32> to vector<32xf32>
    %31 = vector.shape_cast %30 : vector<32xf32> to vector<32x1xf32>
    %cst_18 = arith.constant 6.400000e+01 : f32
    %32 = vector.broadcast %cst_18 : f32 to vector<32x1xf32>
    %33 = arith.divf %31, %32 : vector<32x1xf32>
    %cst_19 = arith.constant 1.000000e-07 : f32
    %34 = vector.broadcast %cst_19 : f32 to vector<32x1xf32>
    %35 = arith.addf %33, %34 : vector<32x1xf32>
    %36 = math.rsqrt %35 : vector<32x1xf32>
    %c0_20 = arith.constant 0 : index
    %c0_21 = arith.constant 0 : index
    %37 = vector.load %arg5[%c0_20, %c0_21] : memref<2x64xf32, #tpu.memory_space<vmem>>, vector<1x64xf32>
    %c1_22 = arith.constant 1 : index
    %c0_23 = arith.constant 0 : index
    %38 = vector.load %arg5[%c1_22, %c0_23] : memref<2x64xf32, #tpu.memory_space<vmem>>, vector<1x64xf32>
    %39 = vector.broadcast %36 : vector<32x1xf32> to vector<32x64xf32>
    %40 = arith.mulf %28, %39 : vector<32x64xf32>
    %41 = vector.broadcast %37 : vector<1x64xf32> to vector<32x64xf32>
    %42 = arith.mulf %40, %41 : vector<32x64xf32>
    %43 = vector.broadcast %38 : vector<1x64xf32> to vector<32x64xf32>
    %44 = arith.addf %42, %43 : vector<32x64xf32>
    %c0_24 = arith.constant 0 : index
    %c0_25 = arith.constant 0 : index
    %45 = vector.load %arg6[%c0_24, %c0_25] : memref<32x1xf32, #tpu.memory_space<vmem>>, vector<32x1xf32>
    %46 = vector.broadcast %45 : vector<32x1xf32> to vector<32x64xf32>
    %47 = arith.mulf %44, %46 : vector<32x64xf32>
    %c0_26 = arith.constant 0 : index
    %c0_27 = arith.constant 0 : index
    %48 = vector.load %arg7[%c0_26, %c0_27] : memref<32x64xf32, #tpu.memory_space<vmem>>, vector<32x64xf32>
    tpu.vector_store %arg7[%c0_26, %c0_27], %47 {strides = array<i32>} : memref<32x64xf32, #tpu.memory_space<vmem>>, vector<32x64xf32>,
    return
  }
}

</mosaic_0001>

<bundles_post_ra>
// kernel: deberta_v2_embeddings.1
= control target key start
LH: loop header
LB: loop body
LE: loop exit
PB: predicated region body
PF: predicated region fallthrough
CT: control target
= control target key end

     0   :  { %v526_v2 = vmov 0   ;;  %s691_s0 = inlined_call_operand.vmem [shape: s32[16,1], index: 0, kind: input, shape index: {}]   ;;  %s692_s1 = inlined_call_operand.vmem [shape: f32[128,32], index: 1, kind: input, shape index: {}]   ;;  %s693_s2 = inlined_call_operand.vmem [shape: f32[2,8,32], index: 2, kind: input, shape index: {}]   ;;  %s694_s3 = inlined_call_operand.vmem [shape: f32[16,32], index: 3, kind: input, shape index: {}]   ;;  %s695_s4 = inlined_call_operand.vmem [shape: f32[32,64], index: 4, kind: input, shape index: {}]   ;;  %s696_s5 = inlined_call_operand.vmem [shape: f32[2,64], index: 5, kind: input, shape index: {}]   ;;  %s697_s6 = inlined_call_operand.vmem [shape: f32[32,1], index: 6, kind: input, shape index: {}]   ;;  %s698_s7 = inlined_call_operand.hbm [shape: f32[32,64], index: 7, kind: output, shape index: {}]  }
   0x1   :  { %v27_v0 = vld [vmem:[%s691_s0] sm:$0xff]  ;;  %492 = vset.pattern.permute.xlu0 %v526_v2  ;;  %v42_v3 = vld [vmem:[%s692_s1 + $0x8] sm:$0xff]  ;;  %v43_v4 = vld [vmem:[%s692_s1 + $0x10] sm:$0xff]  ;;  %493 = vset.pattern.permute.xlu1 %v526_v2 }
   0x2   :  { %v41_v1 = vld [vmem:[%s692_s1] sm:$0xff]  ;;  %v44_v5 = vld [vmem:[%s692_s1 + $0x18] sm:$0xff]  ;;  %32 = vperm.xlu0 %492, %v27_v0   ;;  %v28_v8 = vld [vmem:[%s691_s0 + $0x8] sm:$0xff] }
   0x3   :  { %v447_v6 = vpack.c.bf16 %v42_v3, %v41_v1  ;;  %v451_v7 = vpack.c.bf16 %v44_v5, %v43_v4  ;;  %v45_v9 = vld [vmem:[%s692_s1 + $0x20] sm:$0xff]  ;;  %v46_v10 = vld [vmem:[%s692_s1 + $0x28] sm:$0xff]  ;;  %v47_v12 = vld [vmem:[%s692_s1 + $0x30] sm:$0xff] }
   0x4   :  { %v455_v11 = vpack.c.bf16 %v46_v10, %v45_v9 }
   0x5   :  { %448 = vmatprep.subr.bf16.mxu0 %v447_v6 }
   0x6   :  { %450 = vmatpush3.bf16.msra.mxu0 %v447_v6  ;;  %35 = vperm.xlu0 %492, %v28_v8  }
   0x7   :  { %452 = vmatprep.subr.bf16.mxu0 %v451_v7 }
   0x8   :  { %12 = vsyncpa [#allocation3], 0  ;;  %v48_v13 = vld [vmem:[%s692_s1 + $0x38] sm:$0xff]  ;;  %v141_v14 = vld [vmem:[%s695_s4] sm:$0xff]  ;;  %v29_v30 = vlaneseq  ;;  %v527_v33 = vmov 1.0   ;;  %vm145_vm2 = vcmask 261120  }
   0x9   :  { %v142_v15 = vld [vmem:[%s695_s4 + $0x8] sm:$0xff]  ;;  %v459_v17 = vpack.c.bf16 %v48_v13, %v47_v12  ;;  %v49_v18 = vld [vmem:[%s692_s1 + $0x40] sm:$0xff]  ;;  %v51_v21 = vld [vmem:[%s692_s1 + $0x50] sm:$0xff]  ;;  %vm243_vm3 = vcmask 523264  }
   0xa   :  { %v479_v16 = vpack.c.bf16 %v142_v15, %v141_v14  ;;  %454 = vmatpush3.bf16.msra.mxu0 %v451_v7  ;;  %v50_v19 = vld [vmem:[%s692_s1 + $0x48] sm:$0xff]  ;;  %v52_v22 = vld [vmem:[%s692_s1 + $0x58] sm:$0xff]  ;;  %v53_v24 = vld [vmem:[%s692_s1 + $0x60] sm:$0xff]  ;;  %v30_v31 = vand.u32 127, %v29_v30 }
   0xb   :  { %456 = vmatprep.subr.bf16.mxu0 %v455_v11  ;;  %v463_v20 = vpack.c.bf16 %v50_v19, %v49_v18  ;;  %v467_v23 = vpack.c.bf16 %v52_v22, %v51_v21  ;;  %v54_v25 = vld [vmem:[%s692_s1 + $0x68] sm:$0xff]  ;;  %v55_v27 = vld [vmem:[%s692_s1 + $0x70] sm:$0xff]  ;;  %v56_v28 = vld [vmem:[%s692_s1 + $0x78] sm:$0xff] }
   0xc   :  { %480 = vmatprep.subr.bf16.mxu1 %v479_v16  ;;  %v471_v26 = vpack.c.bf16 %v54_v25, %v53_v24  ;;  %v475_v29 = vpack.c.bf16 %v56_v28, %v55_v27  ;;  %v143_v35 = vld [vmem:[%s695_s4 + $0x10] sm:$0xff]  ;;  %v144_v36 = vld [vmem:[%s695_s4 + $0x18] sm:$0xff]  ;;  %v133_v38 = vld [vmem:[%s694_s3 + $0x8] sm:$0xff] }
   0xd   :  { %482 = vmatpush3.bf16.msra.mxu1 %v479_v16  ;;  %v483_v37 = vpack.c.bf16 %v144_v36, %v143_v35  ;;  %v134_v39 = vld [vmem:[%s693_s2] sm:$0xff]  ;;  %v365_v45 = vld [vmem:[%s693_s2 + $0x8] sm:$0xff]  ;;  %v317_v58 = vld [vmem:[%s697_s6 + $0x10] sm:$0xff] }
   0xe   :  { %458 = vmatpush3.bf16.msra.mxu0 %v455_v11  ;;  %v132_v40 = vld [vmem:[%s694_s3] sm:$0xff]  ;;  %v136_v43 = vadd.f32 %v134_v39, %v133_v38  ;;  %v140_v47 = vadd.f32 %v365_v45, %v133_v38  ;;  %v316_v57 = vld [vmem:[%s697_s6 + $0x8] sm:$0xff]  ;;  %v318_v15 = vld [vmem:[%s697_s6 + $0x18] sm:$0xff] }
   0xf   :  { %460 = vmatprep.subr.bf16.mxu0 %v459_v17  ;;  %484 = vmatprep.subr.bf16.mxu1 %v483_v37  ;;  %v315_v56 = vld [vmem:[%s697_s6] sm:$0xff] }
  0x11   :  { %486 = vmatpush3.bf16.msra.mxu1 %v483_v37 }
  0x12   :  { %462 = vmatpush3.bf16.msra.mxu0 %v459_v17 }
  0x13   :  { %464 = vmatprep.subr.bf16.mxu0 %v463_v20 }
  0x16   :  { %466 = vmatpush3.bf16.msra.mxu0 %v463_v20 }
  0x17   :  { %468 = vmatprep.subr.bf16.mxu0 %v467_v23 }
  0x1a   :  { %470 = vmatpush3.bf16.msra.mxu0 %v467_v23 }
  0x1b   :  { %472 = vmatprep.subr.bf16.mxu0 %v471_v26 }
  0x1e   :  { %474 = vmatpush3.bf16.msra.mxu0 %v471_v26 }
  0x1f   :  { %476 = vmatprep.subr.bf16.mxu0 %v475_v29 }
  0x22   :  { %478 = vmatpush3.bf16.msra.mxu0 %v475_v29 }
  0x81   :  { %v33_v32 = vpop.permute.xlu0 %32 }
  0x82   :  { %vm37_vm0 = vcmp.eq.s32.totalorder %v30_v31, %v33_v32 }
  0x83   :  { %430 = vmatprep.mubr.msk.f32.mxu0 %vm37_vm0, %v527_v33 }
  0x85   :  { %v36_v34 = vpop.permute.xlu0 %35 }
  0x86   :  { %vm38_vm1 = vcmp.eq.s32.totalorder %v30_v31, %v36_v34  ;;  %v370_v31 = vld [vmem:[%s696_s5] ss:$0 sm:$0xff] }
  0x87   :  { %431 = vmatmul.mubr.msk.f32.vlgmr.msra.gmra.mrb[0].mxu0 %vm38_vm1, %v527_v33  ;;  %v371_v33 = vld [vmem:[%s696_s5 + $0x1] ss:$0 sm:$0xff]  ;;  %s528_s5 = smov [#allocation2]  }
  0x88   :  { %s352_s12 = sshll.u32 %s528_s5, 4  ;;  %s353_s12 = int_to_ptr.vmem [resolvable:$true] %s352_s12 }
  0x89   :  { %s502_s13 = scalar_lea.vmem %s353_s12, 512  ;;  %p507_p1 = scmp.lt.s32.totalorder %s353_s12, %s353_s12 }
  0x8a   :  { %p503_p0 = scmp.ne.s32.totalorder %s353_s12, %s502_s13  ;;  %p508_p2 = scmp.lt.s32.totalorder %s502_s13, %s502_s13 }
  0x8c   :  { %p509_p3 = por %p508_p2, %p507_p1 }
  0x8e   :  { %p510_p4 = pnand %p509_p3, %p503_p0 }
 0x15a   :  { %v432_v41 = vpop.f32.mrb[0].mxu0 }
 0x15b   :  { %v123_v42 = vpop.f32.mrb[1].mxu0  ;;  %v139_v46 = vadd.f32 %v432_v41, %v132_v40 }
 0x15c   :  { %v135_v44 = vadd.f32 %v132_v40, %v123_v42 }
 0x15e   :  { %441 = vmatprep.mubr.msk.f32.mxu1 %vm145_vm2, %v135_v44 }
 0x15f   :  { %442 = vmatmul.mubr.msk.f32.vlgmr.msra.gmra.mrb[0].mxu1 %vm145_vm2, %v136_v43 }
 0x160   :  { %444 = vmatprep.mubr.msk.f32.mxu1 %vm145_vm2, %v139_v46 }
 0x163   :  { %445 = vmatmul.mubr.msk.f32.gmra.mrb[2].mxu1 %vm145_vm2, %v140_v47 }
 0x232   :  { %v443_v48 = vpop.f32.mrb[0].mxu1 }
 0x233   :  { %v224_v49 = vpop.f32.mrb[1].mxu1  ;;  %v247_v50 = vsel %vm243_vm3, %v443_v48, 0.0 }
 0x234   :  { %248 = vadd.xlane.f32.xlu1 %v247_v50  ;;  %v244_v53 = vsel %vm243_vm3, %v224_v49, 0.0 }
 0x236   :  { %v446_v51 = vpop.f32.mrb[2].mxu1 }
 0x237   :  { %v234_v52 = vpop.f32.mrb[3].mxu1  ;;  %v253_v55 = vsel %vm243_vm3, %v446_v51, 0.0 }
 0x238   :  { %245 = vadd.xlane.f32.xlu1 %v244_v53  ;;  %v250_v54 = vsel %vm243_vm3, %v234_v52, 0.0 }
 0x239   :  { %251 = vadd.xlane.f32.xlu0 %v250_v54 }
 0x23c   :  { %254 = vadd.xlane.f32.xlu1 %v253_v55 }
 0x24d   :  { %321 = vperm.xlu1 %493, %v315_v56  }
 0x24f   :  { %326 = vperm.xlu0 %492, %v316_v57  }
 0x251   :  { %331 = vperm.xlu1 %493, %v317_v58  }
 0x2c1   :  { %v249_v59 = vpop.xlane.xlu1 %248 }
 0x2c2   :  { %v258_v60 = vmul.f32 0.015625, %v249_v59 }
 0x2c4   :  { %v262_v61 = vsub.f32 %v443_v48, %v258_v60 }
 0x2c5   :  { %v246_v62 = vpop.xlane.xlu1 %245 }
 0x2c6   :  { %v257_v63 = vmul.f32 0.015625, %v246_v62  ;;  %v252_v0 = vpop.xlane.xlu0 %251  ;;  %v266_v1 = vmul.f32 %v262_v61, %v262_v61 }
 0x2c7   :  { %v259_v3 = vmul.f32 0.015625, %v252_v0 }
 0x2c8   :  { %v261_v2 = vsub.f32 %v224_v49, %v257_v63  ;;  %v272_v4 = vsel %vm243_vm3, %v266_v1, 0.0 }
 0x2c9   :  { %273 = vadd.xlane.f32.xlu1 %v272_v4  ;;  %v255_v5 = vpop.xlane.xlu1 %254  ;;  %v263_v8 = vsub.f32 %v234_v52, %v259_v3 }
 0x2ca   :  { %v260_v6 = vmul.f32 0.015625, %v255_v5  ;;  %v265_v7 = vmul.f32 %v261_v2, %v261_v2 }
 0x2cb   :  { %v267_v13 = vmul.f32 %v263_v8, %v263_v8 }
 0x2cc   :  { %v264_v9 = vsub.f32 %v446_v51, %v260_v6  ;;  %v269_v10 = vsel %vm243_vm3, %v265_v7, 0.0 }
 0x2cd   :  { %270 = vadd.xlane.f32.xlu1 %v269_v10  ;;  %v275_v14 = vsel %vm243_vm3, %v267_v13, 0.0  ;;  %v322_v16 = vpop.permute.xlu1 %321 }
 0x2ce   :  { %v268_v11 = vmul.f32 %v264_v9, %v264_v9  ;;  %v327_v38 = vpop.permute.xlu0 %326 }
 0x2d0   :  { %v278_v12 = vsel %vm243_vm3, %v268_v11, 0.0 }
 0x2d1   :  { %279 = vadd.xlane.f32.xlu1 %v278_v12  ;;  %v332_v17 = vpop.permute.xlu1 %331 }
 0x2d5   :  { %276 = vadd.xlane.f32.xlu1 %v275_v14 }
 0x2e6   :  { %336 = vperm.xlu1 %493, %v318_v15  }
 0x356   :  { %v274_v18 = vpop.xlane.xlu1 %273 }
 0x357   :  { %v282_v19 = vmul.f32 0.015625, %v274_v18 }
 0x359   :  { %v286_v20 = vadd.f32 1e-07, %v282_v19 }
 0x35a   :  { %v271_v21 = vpop.xlane.xlu1 %270 }
 0x35b   :  { %494 = vrsqrt.f32 %v286_v20  ;;  %v281_v22 = vmul.f32 0.015625, %v271_v21 }
 0x35d   :  { %v285_v23 = vadd.f32 1e-07, %v281_v22 }
 0x35e   :  { %v280_v24 = vpop.xlane.xlu1 %279 }
 0x35f   :  { %496 = vrsqrt.f32 %v285_v23  ;;  %v284_v25 = vmul.f32 0.015625, %v280_v24 }
 0x361   :  { %v288_v26 = vadd.f32 1e-07, %v284_v25 }
 0x362   :  { %v277_v27 = vpop.xlane.xlu1 %276 }
 0x363   :  { %498 = vrsqrt.f32 %v288_v26  ;;  %v283_v28 = vmul.f32 0.015625, %v277_v27 }
 0x365   :  { %v495_v29 = vpop.eup %494  ;;  %v287_v30 = vadd.f32 1e-07, %v283_v28 }
 0x366   :  { %v296_v32 = vmul.f32 %v495_v29, %v262_v61  ;;  %v337_v49 = vpop.permute.xlu1 %336 }
 0x367   :  { %500 = vrsqrt.f32 %v287_v30 }
 0x368   :  { %v304_v34 = vmul.f32 %v370_v31, %v296_v32 }
 0x369   :  { %v497_v35 = vpop.eup %496 }
 0x36a   :  { %v295_v36 = vmul.f32 %v497_v35, %v261_v2  ;;  %v312_v37 = vadd.f32 %v371_v33, %v304_v34 }
 0x36c   :  { %v303_v39 = vmul.f32 %v370_v31, %v295_v36  ;;  %v340_v40 = vmul.f32 %v327_v38, %v312_v37 }
 0x36d   :  { %v499_v41 = vpop.eup %498 }
 0x36e   :  { %v298_v42 = vmul.f32 %v499_v41, %v264_v9  ;;  %v311_v43 = vadd.f32 %v371_v33, %v303_v39  ;;  %344 = vst.msk [vmem:[#allocation2 + $0x8] sm:$0xff] %vm243_vm3, %v340_v40 }
 0x370   :  { %v306_v44 = vmul.f32 %v370_v31, %v298_v42  ;;  %v339_v45 = vmul.f32 %v322_v16, %v311_v43 }
 0x371   :  { %v501_v46 = vpop.eup %500 }
 0x372   :  { %v297_v47 = vmul.f32 %v501_v46, %v263_v8  ;;  %v314_v48 = vadd.f32 %v371_v33, %v306_v44  ;;  %343 = vst.msk [vmem:[#allocation2] sm:$0xff] %vm243_vm3, %v339_v45 }
 0x374   :  { %v305_v50 = vmul.f32 %v370_v31, %v297_v47  ;;  %v342_v51 = vmul.f32 %v337_v49, %v314_v48 }
 0x376   :  { %v313_v52 = vadd.f32 %v371_v33, %v305_v50  ;;  %346 = vst.msk [vmem:[#allocation2 + $0x18] sm:$0xff] %vm243_vm3, %v342_v51 }
 0x378   :  { %v341_v53 = vmul.f32 %v332_v17, %v313_v52 }
 0x37a   :  { %345 = vst.msk [vmem:[#allocation2 + $0x10] sm:$0xff] %vm243_vm3, %v341_v53 }
 0x37b   :  { %513 = shalt.err (!%p510_p4)
}
 0x37c   :  { %s514_s16 = scalar_lea.hbm %s698_s7, 512 }
 0x37d   :  { %p515_p5 = scmp.ne.s32.totalorder %s698_s7, %s514_s16  ;;  %p518_p6 = scmp.lt.u32.totalorder %s514_s16, %s698_s7 }
 0x37f   :  { %p520_p7 = pnand %p518_p6, %p515_p5 }
 0x381   :  { %523 = shalt.err (!%p520_p7)
}
 0x382   :  { %s529_s0 = smov 128   ;;  %s530_s20 = smov 8  }
 0x383   :  { %358 = dma.vmem_to_hbm [thread:$0]  %s353_s12, 512, %s698_s7, [#allocation3], %s529_s0, %s529_s0, %s530_s20  }
 0x384   :  { %524 = dma.done.wait [#allocation3], 512  }
 0x385   :  { %525 = vsyncadd [#allocation3], 4294966784 }
 0x386   :  { %362 = vsyncpa [#allocation3], 1 }

</bundles_post_ra>
